<compile_context>
chip_gen: v7x
topology: tpu7x:2x2x1
jax: 0.10.0
libtpu: 0.0.40
codegen_flags: <defaults>
</compile_context>

<pallas_src>
import functools

import jax
import jax.numpy as jnp
from jax.experimental import pallas as pl
from jax.experimental.pallas import tpu as pltpu

LANE = 128  # TPU lane width: last-dim tiles want multiples of this.


def _round_up(x, m):
    return ((x + m - 1) // m) * m


def mlp_kernel(x_ref, w1_ref, b1_ref, w2_ref, b2_ref, o_ref):
    # fc1 on the MXU: bf16 x bf16 -> f32 accumulate.
    h = jnp.dot(x_ref[...], w1_ref[...], preferred_element_type=jnp.float32)
    # Bias add + ReLU in f32 on the VPU (portable: v5e has no bf16 VPU).
    h = jnp.maximum(h + b1_ref[...], 0.0)
    # fc2: downcast the activation only at the MXU input; accumulate in f32.
    out = jnp.dot(h.astype(w2_ref.dtype), w2_ref[...],
                  preferred_element_type=jnp.float32)
    # Lane-dense (128-wide) unmasked store; padded columns are exact zeros.
    o_ref[...] = (out + b2_ref[...]).astype(o_ref.dtype)


@functools.partial(jax.jit, static_argnames=("block_b",))
def mlp_forward(x, w1, b1, w2, b2, *, block_b=128):
    batch, in_features = x.shape
    in_w1, hidden = w1.shape
    hidden2, num_classes = w2.shape
    assert in_w1 == in_features and hidden2 == hidden

    # Host-side zero padding: lane-dense K (in_features) and N (num_classes),
    # plus the batch remainder. Zero pads contribute exactly 0 under f32
    # accumulation; padded output columns/rows are sliced off below.
    in_p = _round_up(in_features, LANE)
    out_p = _round_up(num_classes, LANE)
    batch_p = _round_up(batch, block_b)

    x_p = jnp.zeros((batch_p, in_p), jnp.bfloat16).at[:batch, :in_features].set(
        x.astype(jnp.bfloat16))
    w1_p = jnp.zeros((in_p, hidden), jnp.bfloat16).at[:in_features, :].set(
        w1.astype(jnp.bfloat16))
    b1_p = b1.astype(jnp.float32).reshape(1, hidden)
    w2_p = jnp.zeros((hidden, out_p), jnp.bfloat16).at[:, :num_classes].set(
        w2.astype(jnp.bfloat16))
    b2_p = jnp.zeros((1, out_p), jnp.float32).at[:, :num_classes].set(
        b2.astype(jnp.float32).reshape(1, num_classes))

    grid = (batch_p // block_b,)

    cost = pl.CostEstimate(
        flops=2 * batch_p * (in_p * hidden + hidden * out_p),
        transcendentals=0,
        bytes_accessed=(x_p.size * 2 + w1_p.size * 2 + w2_p.size * 2
                        + b1_p.size * 4 + b2_p.size * 4 + batch_p * out_p * 4),
    )

    out = pl.pallas_call(
        mlp_kernel,
        out_shape=jax.ShapeDtypeStruct((batch_p, out_p), jnp.float32),
        grid_spec=pltpu.PrefetchScalarGridSpec(
            num_scalar_prefetch=0,
            grid=grid,
            in_specs=[
                # x: tile over batch only; full (padded) feature dim per tile.
                pl.BlockSpec((block_b, in_p), lambda i: (i, 0)),
                # Weights / biases: whole arrays with a constant block index,
                # so they are DMA'd once and stay resident in VMEM across all
                # batch tiles.
                pl.BlockSpec((in_p, hidden), lambda i: (0, 0)),
                pl.BlockSpec((1, hidden), lambda i: (0, 0)),
                pl.BlockSpec((hidden, out_p), lambda i: (0, 0)),
                pl.BlockSpec((1, out_p), lambda i: (0, 0)),
            ],
            out_specs=pl.BlockSpec((block_b, out_p), lambda i: (i, 0)),
        ),
        compiler_params=pltpu.CompilerParams(
            dimension_semantics=("parallel",),
            vmem_limit_bytes=32 * 1024 * 1024,
        ),
        cost_estimate=cost,
    )(x_p, w1_p, b1_p, w2_p, b2_p)

    # Slice padded batch rows and padded class columns back off.
    return out[:batch, :num_classes]


def init_params(key, input_size, hidden_size, num_classes):
    """Deterministic PyTorch-style (uniform +/- 1/sqrt(fan_in)) initialization."""
    k1, k2, k3, k4 = jax.random.split(key, 4)
    bound1 = 1.0 / jnp.sqrt(jnp.float32(input_size))
    bound2 = 1.0 / jnp.sqrt(jnp.float32(hidden_size))
    # Stored as [in, out] (already transposed relative to PyTorch's [out, in]).
    w1 = jax.random.uniform(k1, (input_size, hidden_size), jnp.float32, -bound1, bound1)
    b1 = jax.random.uniform(k2, (1, hidden_size), jnp.float32, -bound1, bound1)
    w2 = jax.random.uniform(k3, (hidden_size, num_classes), jnp.float32, -bound2, bound2)
    b2 = jax.random.uniform(k4, (1, num_classes), jnp.float32, -bound2, bound2)
    return w1, b1, w2, b2


if __name__ == "__main__":
    # Shapes implied by the script: input_size = 100 (top-100 RF features),
    # hidden_size = 128, num_classes = 2. Batch chosen so the grid has 2 steps
    # with block_b=128 (full MXU rows + room for megacore sharding).
    batch = 256
    input_size = 100
    hidden_size = 128
    num_classes = 2
    block_b = 128

    key = jax.random.PRNGKey(0)
    kx, kp = jax.random.split(key)
    x = jax.random.normal(kx, (batch, input_size), dtype=jnp.float32)
    w1, b1, w2, b2 = init_params(kp, input_size, hidden_size, num_classes)

    out = mlp_forward(x, w1, b1, w2, b2, block_b=block_b)
    out = jax.block_until_ready(out)
    assert out.shape == (batch, num_classes)

    # Reference using the same bf16-input / f32-accumulate compute path.
    x_bf, w1_bf, w2_bf = (a.astype(jnp.bfloat16) for a in (x, w1, w2))
    h_ref = jnp.maximum(
        jnp.dot(x_bf, w1_bf, preferred_element_type=jnp.float32) + b1, 0.0)
    ref_bf = jnp.dot(h_ref.astype(jnp.bfloat16), w2_bf,
                     preferred_element_type=jnp.float32) + b2
    assert jnp.allclose(out, ref_bf, atol=2e-3, rtol=2e-3), "mismatch vs bf16 reference"

    # Sanity check against the pure-f32 PyTorch-equivalent forward
    # (loose tolerance: inputs were rounded to bf16 at the MXU).
    ref_f32 = jnp.maximum(x @ w1 + b1, 0.0) @ w2 + b2
    assert jnp.allclose(out, ref_f32, atol=5e-2, rtol=5e-2), "mismatch vs f32 reference"

    print("KERNEL_OK")
</pallas_src>

<mosaic_0001>
module attributes {stable_mosaic.version = 11 : i64} {
  func.func @mlp_kernel(%arg0: i32, %arg1: memref<128x128xbf16, #tpu.memory_space<vmem>>, %arg2: memref<128x128xbf16, #tpu.memory_space<vmem>>, %arg3: memref<1x128xf32, #tpu.memory_space<vmem>>, %arg4: memref<128x128xbf16, #tpu.memory_space<vmem>>, %arg5: memref<1x128xf32, #tpu.memory_space<vmem>>, %arg6: memref<128x128xf32, #tpu.memory_space<vmem>>) attributes {dimension_semantics = [#tpu.dimension_semantics<parallel>], iteration_bounds = array<i64: 2>, scalar_prefetch = 0 : i64, scratch_operands = 0 : i64, tpu.core_type = #tpu.core_type<tc>, window_params = [{transform_indices = @transform_0, window_bounds = array<i64: 128, 128>}, {pipeline_mode = #tpu.pipeline_mode<synchronous>, transform_indices = @transform_1, window_bounds = array<i64: 128, 128>}, {pipeline_mode = #tpu.pipeline_mode<synchronous>, transform_indices = @transform_2, window_bounds = array<i64: 1, 128>}, {pipeline_mode = #tpu.pipeline_mode<synchronous>, transform_indices = @transform_3, window_bounds = array<i64: 128, 128>}, {pipeline_mode = #tpu.pipeline_mode<synchronous>, transform_indices = @transform_4, window_bounds = array<i64: 1, 128>}, {transform_indices = @transform_5, window_bounds = array<i64: 128, 128>}]} {
    %c0 = arith.constant 0 : index
    %c0_0 = arith.constant 0 : index
    %0 = vector.load %arg1[%c0, %c0_0] : memref<128x128xbf16, #tpu.memory_space<vmem>>, vector<128x128xbf16>
    %c0_1 = arith.constant 0 : index
    %c0_2 = arith.constant 0 : index
    %1 = vector.load %arg2[%c0_1, %c0_2] : memref<128x128xbf16, #tpu.memory_space<vmem>>, vector<128x128xbf16>
    %cst = arith.constant dense<0.000000e+00> : vector<128x128xf32>
    %2 = tpu.matmul %0, %1, %cst {dimension_numbers = #tpu.dot_dimension_numbers<[1], [0], [0], [1], [0, 0, 1, 1], [], []>} : vector<128x128xbf16>, vector<128x128xbf16>, vector<128x128xf32> -> vector<128x128xf32>
    %c0_3 = arith.constant 0 : index
    %c0_4 = arith.constant 0 : index
    %3 = vector.load %arg3[%c0_3, %c0_4] : memref<1x128xf32, #tpu.memory_space<vmem>>, vector<1x128xf32>
    %4 = vector.broadcast %3 : vector<1x128xf32> to vector<128x128xf32>
    %5 = arith.addf %2, %4 : vector<128x128xf32>
    %cst_5 = arith.constant 0.000000e+00 : f32
    %6 = vector.broadcast %cst_5 : f32 to vector<128x128xf32>
    %7 = arith.maximumf %5, %6 : vector<128x128xf32>
    %8 = arith.truncf %7 : vector<128x128xf32> to vector<128x128xbf16>
    %c0_6 = arith.constant 0 : index
    %c0_7 = arith.constant 0 : index
    %9 = vector.load %arg4[%c0_6, %c0_7] : memref<128x128xbf16, #tpu.memory_space<vmem>>, vector<128x128xbf16>
    %cst_8 = arith.constant dense<0.000000e+00> : vector<128x128xf32>
    %10 = tpu.matmul %8, %9, %cst_8 {dimension_numbers = #tpu.dot_dimension_numbers<[1], [0], [0], [1], [0, 0, 1, 1], [], []>} : vector<128x128xbf16>, vector<128x128xbf16>, vector<128x128xf32> -> vector<128x128xf32>
    %c0_9 = arith.constant 0 : index
    %c0_10 = arith.constant 0 : index
    %11 = vector.load %arg5[%c0_9, %c0_10] : memref<1x128xf32, #tpu.memory_space<vmem>>, vector<1x128xf32>
    %12 = vector.broadcast %11 : vector<1x128xf32> to vector<128x128xf32>
    %13 = arith.addf %10, %12 : vector<128x128xf32>
    %c0_11 = arith.constant 0 : index
    %c0_12 = arith.constant 0 : index
    %14 = vector.load %arg6[%c0_11, %c0_12] : memref<128x128xf32, #tpu.memory_space<vmem>>, vector<128x128xf32>
    tpu.vector_store %arg6[%c0_11, %c0_12], %13 {strides = array<i32>} : memref<128x128xf32, #tpu.memory_space<vmem>>, vector<128x128xf32>,
    return
  }
  func.func @transform_0(%arg0: i32) -> (i32, i32) {
    %c0_i32 = arith.constant 0 : i32
    %c0_i32_0 = arith.constant 0 : i32
    return %arg0, %c0_i32 : i32, i32
  }
  func.func @transform_1(%arg0: i32) -> (i32, i32) {
    %c0_i32 = arith.constant 0 : i32
    %c0_i32_0 = arith.constant 0 : i32
    %c0_i32_1 = arith.constant 0 : i32
    return %c0_i32, %c0_i32_0 : i32, i32
  }
  func.func @transform_2(%arg0: i32) -> (i32, i32) {
    %c0_i32 = arith.constant 0 : i32
    %c0_i32_0 = arith.constant 0 : i32
    %c0_i32_1 = arith.constant 0 : i32
    return %c0_i32, %c0_i32_0 : i32, i32
  }
  func.func @transform_3(%arg0: i32) -> (i32, i32) {
    %c0_i32 = arith.constant 0 : i32
    %c0_i32_0 = arith.constant 0 : i32
    %c0_i32_1 = arith.constant 0 : i32
    return %c0_i32, %c0_i32_0 : i32, i32
  }
  func.func @transform_4(%arg0: i32) -> (i32, i32) {
    %c0_i32 = arith.constant 0 : i32
    %c0_i32_0 = arith.constant 0 : i32
    %c0_i32_1 = arith.constant 0 : i32
    return %c0_i32, %c0_i32_0 : i32, i32
  }
  func.func @transform_5(%arg0: i32) -> (i32, i32) {
    %c0_i32 = arith.constant 0 : i32
    %c0_i32_0 = arith.constant 0 : i32
    return %arg0, %c0_i32 : i32, i32
  }
}

</mosaic_0001>

<bundles_post_ra>
// kernel: mlp_forward.1
= control target key start
LH: loop header
LB: loop body
LE: loop exit
PB: predicated region body
PF: predicated region fallthrough
CT: control target
= control target key end

     0   :  { %s928_s18 = smov 0   ;;  %s1031_s0 = inlined_call_operand.vmem [shape: bf16[256,128], index: 0, kind: input, shape index: {}]   ;;  %s1032_s1 = inlined_call_operand.vmem [shape: bf16[128,128], index: 1, kind: input, shape index: {}]   ;;  %s1033_s2 = inlined_call_operand.vmem [shape: f32[1,128], index: 2, kind: input, shape index: {}]   ;;  %s1034_s3 = inlined_call_operand.vmem [shape: bf16[128,128], index: 3, kind: input, shape index: {}]   ;;  %s1035_s4 = inlined_call_operand.vmem [shape: f32[1,128], index: 4, kind: input, shape index: {}]   ;;  %s1036_s5 = inlined_call_operand.vmem [shape: f32[256,128], index: 5, kind: output, shape index: {}]  }
   0x1 LB: > { %s725_s19 = sadd.s32 4294967295, %s896_s18   ;;  %p729_p0 = scmp.ge.s32.totalorder %s896_s18, 1  ;;  %s896_s18 = sphi %s928_s18, %s15_s18  }
   0x2   : > { %p188_p1 = scmp.lt.s32.totalorder %s896_s18, 3 }
   0x4   : > { %p189_p2 = pnand %p729_p0, %p188_p1 }
   0x5   : > { %v866_v0 = vld [vmem:[%s1032_s1] sm:$0xff] (!%p189_p2)   ;;  %s730_s22 = sshll.u32 (!%p189_p2), %s725_s19, 4  ;;  %v867_v1 = vld [vmem:[%s1032_s1 + $0x8] sm:$0xff] (!%p189_p2)   ;;  %v868_v2 = vld [vmem:[%s1032_s1 + $0x10] sm:$0xff] (!%p189_p2)  }
   0x6   : > { %192 = sbr.rel (%p189_p2) target bundleno = 502 (0x1f6), region = 40  ;;  %p217_p3 = scmp.lt.s32.totalorder (!%p189_p2), %s730_s22, 31  ;;  %794 = vmatprep.subr.bf16.mxu0 (!%p189_p2), %v866_v0  ;;  %v869_v3 = vld [vmem:[%s1032_s1 + $0x18] sm:$0xff] (!%p189_p2)   ;;  %v870_v5 = vld [vmem:[%s1032_s1 + $0x20] sm:$0xff] (!%p189_p2)   ;;  %v871_v6 = vld [vmem:[%s1032_s1 + $0x28] sm:$0xff] (!%p189_p2)  }
   0x7   : > { %795 = vmatpush3.bf16.msra.mxu0 (!%p189_p2), %v866_v0  ;;  %v882_v7 = vld [vmem:[%s1034_s3] sm:$0xff] (!%p189_p2)   ;;  %v883_v8 = vld [vmem:[%s1034_s3 + $0x8] sm:$0xff] (!%p189_p2)   ;;  %v872_v9 = vld [vmem:[%s1032_s1 + $0x30] sm:$0xff] (!%p189_p2)  }
   0x8   : > { %796 = vmatprep.subr.bf16.mxu0 (!%p189_p2), %v867_v1  ;;  %826 = vmatprep.subr.bf16.mxu1 (!%p189_p2), %v882_v7  ;;  %v884_v10 = vld [vmem:[%s1034_s3 + $0x10] sm:$0xff] (!%p189_p2)   ;;  %v873_v11 = vld [vmem:[%s1032_s1 + $0x38] sm:$0xff] (!%p189_p2)   ;;  %v886_v13 = vld [vmem:[%s1034_s3 + $0x20] sm:$0xff] (!%p189_p2)  }
   0x9   : > { %827 = vmatpush3.bf16.msra.mxu1 (!%p189_p2), %v882_v7  ;;  %v885_v12 = vld [vmem:[%s1034_s3 + $0x18] sm:$0xff] (!%p189_p2)   ;;  %v887_v16 = vld [vmem:[%s1034_s3 + $0x28] sm:$0xff] (!%p189_p2)   ;;  %v888_v22 = vld [vmem:[%s1034_s3 + $0x30] sm:$0xff] (!%p189_p2)  }
   0xa   : > { %828 = vmatprep.subr.bf16.mxu1 (!%p189_p2), %v883_v8  ;;  %v889_v23 = vld [vmem:[%s1034_s3 + $0x38] sm:$0xff] (!%p189_p2)   ;;  %v734_v24 = vld [vmem:[%s1033_s2] ss:$0 sm:$0xff] (!%p189_p2) }
   0xb   : > { %797 = vmatpush3.bf16.msra.mxu0 (!%p189_p2), %v867_v1 }
   0xc   : > { %798 = vmatprep.subr.bf16.mxu0 (!%p189_p2), %v868_v2 }
   0xd   : > { %s1038_s22 = smov (!%p217_p3, %s730_s22), 31  ;;  %829 = vmatpush3.bf16.msra.mxu1 %v883_v8 }
   0xe   : > { %s731_s27 = sshll.u32 %s1038_s22, 2  ;;  %830 = vmatprep.subr.bf16.mxu1 %v884_v10 }
   0xf   : > { %s951_s30 = scalar_lea.vmem %s1031_s0, %s731_s27  ;;  %799 = vmatpush3.bf16.msra.mxu0 %v868_v2 }
  0x10   : > { %v874_v4 = vld [vmem:[%s951_s30] sm:$0xff]   ;;  %800 = vmatprep.subr.bf16.mxu0 %v869_v3  ;;  %v875_v14 = vld [vmem:[%s951_s30 + $0x8] sm:$0xff]   ;;  %v876_v15 = vld [vmem:[%s951_s30 + $0x10] sm:$0xff]  }
  0x11   : > { %810 = vmatprep.mubr.bf16.mxu0 %v874_v4  ;;  %831 = vmatpush3.bf16.msra.mxu1 %v884_v10  ;;  %v877_v17 = vld [vmem:[%s951_s30 + $0x18] sm:$0xff]   ;;  %v878_v18 = vld [vmem:[%s951_s30 + $0x20] sm:$0xff]   ;;  %v879_v19 = vld [vmem:[%s951_s30 + $0x28] sm:$0xff]  }
  0x12   : > { %832 = vmatprep.subr.bf16.mxu1 %v885_v12  ;;  %v880_v20 = vld [vmem:[%s951_s30 + $0x30] sm:$0xff]   ;;  %v881_v21 = vld [vmem:[%s951_s30 + $0x38] sm:$0xff]   ;;  %s733_s30 = sshll.u32 %s1038_s22, 3 }
  0x13   : > { %801 = vmatpush3.bf16.msra.mxu0 %v869_v3  ;;  %s1010_s16 = scalar_lea.vmem %s1036_s5, %s733_s30 }
  0x14   : > { %802 = vmatprep.subr.bf16.mxu0 %v870_v5 }
  0x15   : > { %833 = vmatpush3.bf16.msra.mxu1 %v885_v12 }
  0x16   : > { %834 = vmatprep.subr.bf16.mxu1 %v886_v13 }
  0x17   : > { %803 = vmatpush3.bf16.msra.mxu0 %v870_v5 }
  0x18   : > { %804 = vmatprep.subr.bf16.mxu0 %v871_v6 }
  0x19   : > { %835 = vmatpush3.bf16.msra.mxu1 %v886_v13 }
  0x1a   : > { %836 = vmatprep.subr.bf16.mxu1 %v887_v16 }
  0x1b   : > { %805 = vmatpush3.bf16.msra.mxu0 %v871_v6 }
  0x1c   : > { %806 = vmatprep.subr.bf16.mxu0 %v872_v9 }
  0x1d   : > { %837 = vmatpush3.bf16.msra.mxu1 %v887_v16 }
  0x1e   : > { %838 = vmatprep.subr.bf16.mxu1 %v888_v22 }
  0x1f   : > { %807 = vmatpush3.bf16.msra.mxu0 %v872_v9 }
  0x20   : > { %808 = vmatprep.subr.bf16.mxu0 %v873_v11 }
  0x21   : > { %839 = vmatpush3.bf16.msra.mxu1 %v888_v22 }
  0x22   : > { %840 = vmatprep.subr.bf16.mxu1 %v889_v23 }
  0x23   : > { %809 = vmatpush3.bf16.msra.mxu0 %v873_v11 }
  0x25   : > { %841 = vmatpush3.bf16.msra.mxu1 %v889_v23 }
  0x26   : > { %811 = vmatmul.mubr.bf16.vlgmr.msra.gmra.mrb[0].mxu0 %v875_v14 }
  0x27   : > { %814 = vmatprep.mubr.bf16.mxu0 %v876_v15 }
  0x2e   : > { %815 = vmatmul.mubr.bf16.gmra.mrb[4].mxu0 %v877_v17  ;;  %v751_v17 = vld [vmem:[%s1035_s4] ss:$0 sm:$0xff] }
  0x2f   : > { %818 = vmatprep.mubr.bf16.mxu0 %v878_v18 }
  0x36   : > { %819 = vmatmul.mubr.bf16.gmra.mrb[8].mxu0 %v879_v19 }
  0x37   : > { %822 = vmatprep.mubr.bf16.mxu0 %v880_v20 }
  0x3e   : > { %823 = vmatmul.mubr.bf16.gmra.mrb[12].mxu0 %v881_v21 }
  0xf9   : > { %v812_v25 = vpop.f32.mrb[0].mxu0 }
  0xfa   : > { %v407_v26 = vadd.f32 %v812_v25, %v734_v24  ;;  %v398_v27 = vpop.f32.mrb[1].mxu0 }
  0xfb   : > { %v399_v28 = vadd.f32 %v734_v24, %v398_v27  ;;  %v813_v29 = vpop.f32.mrb[2].mxu0 }
  0xfc   : > { %v410_v30 = vadd.f32 %v813_v29, %v734_v24  ;;  %v401_v31 = vpop.f32.mrb[3].mxu0  ;;  %v463_v33 = vmax.f32 %v407_v26, 0.0 }
  0xfd   : > { %v402_v32 = vadd.f32 %v734_v24, %v401_v31  ;;  %v461_v35 = vmax.f32 %v399_v28, 0.0 }
  0xfe   : > { %v464_v34 = vmax.f32 %v410_v30, 0.0 }
  0xff   : > { %v462_v36 = vmax.f32 %v402_v32, 0.0 }
 0x100   : > { %v478_v37 = vpack.c.bf16 %v464_v34, %v463_v33 }
 0x101   : > { %v816_v38 = vpop.f32.mrb[4].mxu0  ;;  %v477_v39 = vpack.c.bf16 %v462_v36, %v461_v35 }
 0x102   : > { %v423_v40 = vadd.f32 %v816_v38, %v734_v24  ;;  %v414_v41 = vpop.f32.mrb[5].mxu0 }
 0x103   : > { %v415_v42 = vadd.f32 %v734_v24, %v414_v41  ;;  %v817_v43 = vpop.f32.mrb[6].mxu0  ;;  %842 = vmatprep.mubr.bf16.mxu1 %v477_v39 }
 0x104   : > { %v426_v44 = vadd.f32 %v817_v43, %v734_v24  ;;  %v417_v45 = vpop.f32.mrb[7].mxu0  ;;  %843 = vmatmul.mubr.bf16.vlgmr.msra.gmra.mrb[0].mxu1 %v478_v37  ;;  %v467_v47 = vmax.f32 %v423_v40, 0.0 }
 0x105   : > { %v418_v46 = vadd.f32 %v734_v24, %v417_v45  ;;  %v465_v49 = vmax.f32 %v415_v42, 0.0 }
 0x106   : > { %v468_v48 = vmax.f32 %v426_v44, 0.0 }
 0x107   : > { %v466_v50 = vmax.f32 %v418_v46, 0.0 }
 0x108   : > { %v480_v51 = vpack.c.bf16 %v468_v48, %v467_v47 }
 0x109   : > { %v479_v52 = vpack.c.bf16 %v466_v50, %v465_v49  ;;  %v820_v53 = vpop.f32.mrb[8].mxu0 }
 0x10a   : > { %v439_v54 = vadd.f32 %v820_v53, %v734_v24  ;;  %v430_v55 = vpop.f32.mrb[9].mxu0 }
 0x10b   : > { %v431_v56 = vadd.f32 %v734_v24, %v430_v55  ;;  %v821_v57 = vpop.f32.mrb[10].mxu0  ;;  %846 = vmatprep.mubr.bf16.mxu1 %v479_v52 }
 0x10c   : > { %v442_v58 = vadd.f32 %v821_v57, %v734_v24  ;;  %v433_v59 = vpop.f32.mrb[11].mxu0  ;;  %847 = vmatmul.mubr.bf16.gmra.mrb[4].mxu1 %v480_v51  ;;  %v471_v61 = vmax.f32 %v439_v54, 0.0 }
 0x10d   : > { %v434_v60 = vadd.f32 %v734_v24, %v433_v59  ;;  %v469_v63 = vmax.f32 %v431_v56, 0.0 }
 0x10e   : > { %v472_v62 = vmax.f32 %v442_v58, 0.0 }
 0x10f   : > { %v470_v0 = vmax.f32 %v434_v60, 0.0 }
 0x110   : > { %v482_v1 = vpack.c.bf16 %v472_v62, %v471_v61 }
 0x111   : > { %v481_v2 = vpack.c.bf16 %v470_v0, %v469_v63  ;;  %v824_v3 = vpop.f32.mrb[12].mxu0 }
 0x112   : > { %v455_v4 = vadd.f32 %v824_v3, %v734_v24  ;;  %v446_v5 = vpop.f32.mrb[13].mxu0 }
 0x113   : > { %v447_v6 = vadd.f32 %v734_v24, %v446_v5  ;;  %v825_v7 = vpop.f32.mrb[14].mxu0  ;;  %850 = vmatprep.mubr.bf16.mxu1 %v481_v2 }
 0x114   : > { %v458_v8 = vadd.f32 %v825_v7, %v734_v24  ;;  %v449_v9 = vpop.f32.mrb[15].mxu0  ;;  %851 = vmatmul.mubr.bf16.gmra.mrb[8].mxu1 %v482_v1  ;;  %v475_v11 = vmax.f32 %v455_v4, 0.0 }
 0x115   : > { %v450_v10 = vadd.f32 %v734_v24, %v449_v9  ;;  %v473_v13 = vmax.f32 %v447_v6, 0.0 }
 0x116   : > { %v476_v12 = vmax.f32 %v458_v8, 0.0 }
 0x117   : > { %v474_v14 = vmax.f32 %v450_v10, 0.0 }
 0x118   : > { %v484_v15 = vpack.c.bf16 %v476_v12, %v475_v11 }
 0x119   : > { %v483_v16 = vpack.c.bf16 %v474_v14, %v473_v13 }
 0x11b   : > { %854 = vmatprep.mubr.bf16.mxu1 %v483_v16 }
 0x11c   : > { %855 = vmatmul.mubr.bf16.gmra.mrb[12].mxu1 %v484_v15 }
 0x1d7   : > { %v844_v18 = vpop.f32.mrb[0].mxu1 }
 0x1d8   : > { %v599_v19 = vadd.f32 %v844_v18, %v751_v17  ;;  %v590_v20 = vpop.f32.mrb[1].mxu1 }
 0x1d9   : > { %v591_v21 = vadd.f32 %v751_v17, %v590_v20  ;;  %v845_v22 = vpop.f32.mrb[2].mxu1 }
 0x1da   : > { %655 = vst [vmem:[%s1010_s16 + $0x10] sm:$0xff] %v599_v19  ;;  %v602_v23 = vadd.f32 %v845_v22, %v751_v17  ;;  %v593_v24 = vpop.f32.mrb[3].mxu1 }
 0x1db   : > { %653 = vst [vmem:[%s1010_s16] sm:$0xff] %v591_v21  ;;  %v594_v25 = vadd.f32 %v751_v17, %v593_v24 }
 0x1dc   : > { %656 = vst [vmem:[%s1010_s16 + $0x18] sm:$0xff] %v602_v23 }
 0x1dd   : > { %654 = vst [vmem:[%s1010_s16 + $0x8] sm:$0xff] %v594_v25 }
 0x1df   : > { %v848_v26 = vpop.f32.mrb[4].mxu1 }
 0x1e0   : > { %v615_v27 = vadd.f32 %v848_v26, %v751_v17  ;;  %v606_v28 = vpop.f32.mrb[5].mxu1 }
 0x1e1   : > { %v607_v29 = vadd.f32 %v751_v17, %v606_v28  ;;  %v849_v30 = vpop.f32.mrb[6].mxu1 }
 0x1e2   : > { %659 = vst [vmem:[%s1010_s16 + $0x30] sm:$0xff] %v615_v27  ;;  %v618_v31 = vadd.f32 %v849_v30, %v751_v17  ;;  %v609_v32 = vpop.f32.mrb[7].mxu1 }
 0x1e3   : > { %657 = vst [vmem:[%s1010_s16 + $0x20] sm:$0xff] %v607_v29  ;;  %v610_v33 = vadd.f32 %v751_v17, %v609_v32 }
 0x1e4   : > { %660 = vst [vmem:[%s1010_s16 + $0x38] sm:$0xff] %v618_v31 }
 0x1e5   : > { %658 = vst [vmem:[%s1010_s16 + $0x28] sm:$0xff] %v610_v33 }
 0x1e7   : > { %v852_v34 = vpop.f32.mrb[8].mxu1 }
 0x1e8   : > { %v631_v35 = vadd.f32 %v852_v34, %v751_v17  ;;  %v622_v36 = vpop.f32.mrb[9].mxu1 }
 0x1e9   : > { %v623_v37 = vadd.f32 %v751_v17, %v622_v36  ;;  %v853_v38 = vpop.f32.mrb[10].mxu1 }
 0x1ea   : > { %663 = vst [vmem:[%s1010_s16 + $0x50] sm:$0xff] %v631_v35  ;;  %v634_v39 = vadd.f32 %v853_v38, %v751_v17  ;;  %v625_v40 = vpop.f32.mrb[11].mxu1 }
 0x1eb   : > { %661 = vst [vmem:[%s1010_s16 + $0x40] sm:$0xff] %v623_v37  ;;  %v626_v41 = vadd.f32 %v751_v17, %v625_v40 }
 0x1ec   : > { %664 = vst [vmem:[%s1010_s16 + $0x58] sm:$0xff] %v634_v39 }
 0x1ed   : > { %662 = vst [vmem:[%s1010_s16 + $0x48] sm:$0xff] %v626_v41 }
 0x1ef   : > { %v856_v42 = vpop.f32.mrb[12].mxu1 }
 0x1f0   : > { %v647_v43 = vadd.f32 %v856_v42, %v751_v17  ;;  %v638_v44 = vpop.f32.mrb[13].mxu1 }
 0x1f1   : > { %v639_v45 = vadd.f32 %v751_v17, %v638_v44  ;;  %v857_v46 = vpop.f32.mrb[14].mxu1 }
 0x1f2   : > { %667 = vst [vmem:[%s1010_s16 + $0x70] sm:$0xff] %v647_v43  ;;  %v650_v47 = vadd.f32 %v857_v46, %v751_v17  ;;  %v641_v48 = vpop.f32.mrb[15].mxu1 }
 0x1f3   : > { %665 = vst [vmem:[%s1010_s16 + $0x60] sm:$0xff] %v639_v45  ;;  %v642_v49 = vadd.f32 %v751_v17, %v641_v48 }
 0x1f4   : > { %668 = vst [vmem:[%s1010_s16 + $0x78] sm:$0xff] %v650_v47 }
 0x1f5   : > { %666 = vst [vmem:[%s1010_s16 + $0x68] sm:$0xff] %v642_v49 }
 0x1f6 PF: > { %s15_s18 = sadd.s32 1, %s896_s18  }
 0x1f7   : > { %p12_p4 = scmp.ge.s32.totalorder %s15_s18, 4  }
 0x1f9   :  { %14 = sbr.rel (!%p12_p4) target bundleno = 1 (0x1), region = 70 }

</bundles_post_ra>
